<compile_context>
chip_gen: v7x
topology: tpu7x:2x2x1
jax: 0.10.0
libtpu: 0.0.40
codegen_flags: <defaults>
</compile_context>

<pallas_src>
import functools

import jax
import jax.numpy as jnp
from jax import lax
from jax.experimental import pallas as pl
from jax.experimental.pallas import tpu as pltpu


_LANE = 128
_SUBLANE = 8


def _round_up(n, m):
    return ((n + m - 1) // m) * m


def _encoder_kernel(x_ref, w_ref, p_ref, o_ref, *, dims, eps):
    """Fused [Linear -> LayerNorm -> ReLU] x L for one batch tile.

    x_ref: (tb, din)            input tile at TRUE feature width (f32)
    w_ref: (L, Dpad, Dpad)      stacked, zero-padded W^T (in, out), bf16
    p_ref: (L, 8, Dpad) f32     rows: 0=bias, 1=gamma, 2=beta, 3=lane mask
    o_ref: (tb, Dpad)           lane-dense output tile (unmasked stores)
    """
    num_layers = len(dims) - 1
    din = dims[0]
    h = x_ref[...].astype(w_ref.dtype)              # bf16 operand for the MXU
    act = None
    for l in range(num_layers):
        dout = dims[l + 1]
        # First layer only needs the true `din` rows of W (K=din matmul is
        # legal); later layers consume the full Dpad-wide activation.
        w_l = w_ref[l, :din, :] if l == 0 else w_ref[l]
        y = jnp.dot(h, w_l, preferred_element_type=jnp.float32)   # MXU, f32 acc

        p = p_ref[l]                                # (8, Dpad) f32
        y = y + p[0:1, :]                           # Linear bias

        # LayerNorm over the TRUE feature width via the packed lane mask
        # (row 3): masked mean + centered, masked variance (avoids the
        # E[y^2]-E[y]^2 cancellation). rsqrt goes to the EUP.
        mask = p[3:4, :]
        inv_d = 1.0 / float(dout)
        mean = jnp.sum(y * mask, axis=-1, keepdims=True) * inv_d
        y_c = (y - mean) * mask                     # exactly 0 on padded lanes
        var = jnp.sum(y_c * y_c, axis=-1, keepdims=True) * inv_d
        y_hat = y_c * lax.rsqrt(var + eps)
        # gamma/beta are 0 on padded lanes -> activation stays exactly 0 there.
        act = jnp.maximum(y_hat * p[1:2, :] + p[2:3, :], 0.0)

        if l + 1 < num_layers:                      # skip dead cast on last layer
            h = act.astype(w_ref.dtype)
        # TODO(synk): if profiling at large batch tiles shows the two lane
        # reductions binding the XLUs, compute them as jnp.dot(y, ones) on the
        # (idle) MXU instead.

    o_ref[...] = act.astype(o_ref.dtype)


def pack_cluster_encoder_params(weights, biases, gammas, betas, dims, *,
                                compute_dtype=jnp.bfloat16):
    """Pack per-layer params into the kernel slabs, zero-filling all padding.

    weights[l] is (dims[l], dims[l+1]) == torch Linear.weight.T. Every padded
    row/col/lane is forced to zero (the kernel's padded-lane invariant), so
    externally loaded checkpoints are sanitized by construction.
    """
    dims = tuple(int(d) for d in dims)
    num_layers = len(dims) - 1
    dpad = _round_up(max(dims), _LANE)
    w_stack = jnp.zeros((num_layers, dpad, dpad), jnp.float32)
    p_stack = jnp.zeros((num_layers, _SUBLANE, dpad), jnp.float32)
    for l in range(num_layers):
        din, dout = dims[l], dims[l + 1]
        w = jnp.asarray(weights[l], jnp.float32)
        assert w.shape == (din, dout), (w.shape, (din, dout))
        w_stack = w_stack.at[l, :din, :dout].set(w)
        p_stack = p_stack.at[l, 0, :dout].set(
            jnp.asarray(biases[l], jnp.float32).reshape(dout))
        p_stack = p_stack.at[l, 1, :dout].set(
            jnp.asarray(gammas[l], jnp.float32).reshape(dout))
        p_stack = p_stack.at[l, 2, :dout].set(
            jnp.asarray(betas[l], jnp.float32).reshape(dout))
        p_stack = p_stack.at[l, 3, :dout].set(1.0)      # LN lane mask
    return w_stack.astype(compute_dtype), p_stack


def init_cluster_encoder_params(dims, key, *, compute_dtype=jnp.bfloat16):
    """Matches ClusterEncoder._init_weight: W~N(0,0.01), b=0, LN gamma=1, beta=0."""
    dims = tuple(int(d) for d in dims)
    assert len(dims) >= 2
    ws, bs, gs, bts = [], [], [], []
    for din, dout in zip(dims[:-1], dims[1:]):
        key, wk = jax.random.split(key)
        ws.append(0.01 * jax.random.normal(wk, (din, dout), dtype=jnp.float32))
        bs.append(jnp.zeros((dout,), jnp.float32))
        gs.append(jnp.ones((dout,), jnp.float32))
        bts.append(jnp.zeros((dout,), jnp.float32))
    return pack_cluster_encoder_params(ws, bs, gs, bts, dims,
                                       compute_dtype=compute_dtype)


def _vmem_capacity_bytes():
    try:
        return int(pltpu.get_tpu_info().vmem_capacity_bytes)
    except Exception:
        return 64 * 1024 * 1024       # conservative: v7x per-TensorCore VMEM


def cluster_encoder_forward(x, w_stack, p_stack, dims, *, eps=1e-5,
                            batch_tile=512, out_dtype=jnp.bfloat16):
    """x: (B, dims[0]) f32 -> (B, dims[-1]) out_dtype; dropout is identity (eval)."""
    dims = tuple(int(d) for d in dims)
    B, din = x.shape
    assert din == dims[0], (din, dims)
    num_layers, dpad, _ = w_stack.shape
    assert num_layers == len(dims) - 1

    # --- Batch tiling --------------------------------------------------------
    # Small batches: ONE grid step (a forced 2-step grid is pure per-step
    # overhead and halves the MXU's M). Large batches: 512-row lane-dense
    # tiles; the resident weight stack, not the activation tile, is what
    # eventually limits VMEM.
    b8 = _round_up(B, _SUBLANE)
    tb = b8 if b8 <= batch_tile else _round_up(int(batch_tile), _SUBLANE)

    # --- Generation-aware VMEM budget (v7x: 64 MiB/TC) -----------------------
    w_item = jnp.dtype(w_stack.dtype).itemsize
    x_item = jnp.dtype(x.dtype).itemsize
    o_item = jnp.dtype(out_dtype).itemsize
    din_pad = _round_up(din, _LANE)

    def _vmem_need(tb_):
        return (2 * num_layers * dpad * dpad * w_item      # weights (<=2 bufs)
                + 2 * num_layers * _SUBLANE * dpad * 4     # bias/gamma/beta/mask
                + 2 * tb_ * din_pad * x_item               # input tiles
                + 2 * tb_ * dpad * o_item                  # output tiles
                + 8 * tb_ * dpad * 4)                      # f32 intermediates

    vmem_cap = int(0.8 * _vmem_capacity_bytes())
    while _vmem_need(tb) > vmem_cap and tb > _SUBLANE:
        tb = max(_SUBLANE, _round_up(tb // 2, _SUBLANE))
    vmem_limit = int(min(vmem_cap, max(2 * _vmem_need(tb), 32 * 1024 * 1024)))

    b_pad = _round_up(B, tb)
    grid_steps = b_pad // tb

    # No wrapper-side lane padding / dtype cast of x: the kernel consumes the
    # true (B, din) slab directly. Only pad the batch dim when required.
    x_in = x if b_pad == B else jnp.pad(x, ((0, b_pad - B), (0, 0)))

    kernel = functools.partial(_encoder_kernel, dims=dims, eps=eps)

    def _call(single_buffer_params):
        if single_buffer_params:
            # Constant index_maps -> parameter slabs are resident; a single
            # buffer halves their VMEM footprint (matters on v7x at large dims).
            w_spec = pl.BlockSpec((num_layers, dpad, dpad), lambda i: (0, 0, 0),
                                  pipeline_mode=pl.Buffered(1))
            p_spec = pl.BlockSpec((num_layers, _SUBLANE, dpad),
                                  lambda i: (0, 0, 0),
                                  pipeline_mode=pl.Buffered(1))
        else:
            w_spec = pl.BlockSpec((num_layers, dpad, dpad), lambda i: (0, 0, 0))
            p_spec = pl.BlockSpec((num_layers, _SUBLANE, dpad),
                                  lambda i: (0, 0, 0))
        return pl.pallas_call(
            kernel,
            out_shape=jax.ShapeDtypeStruct((b_pad, dpad), out_dtype),
            grid_spec=pltpu.PrefetchScalarGridSpec(
                num_scalar_prefetch=0,
                grid=(grid_steps,),
                in_specs=[
                    pl.BlockSpec((tb, din), lambda i: (i, 0)),  # x tile (true width)
                    w_spec,                                     # weights (resident)
                    p_spec,                                     # bias/gamma/beta/mask
                ],
                out_specs=pl.BlockSpec((tb, dpad), lambda i: (i, 0)),
            ),
            compiler_params=pltpu.CompilerParams(
                # TODO(synk): on v7x, verify the batch axis actually shards
                # across both TensorCores (pltpu.CORE_PARALLEL) once per-TC
                # work is well above the ~0.35us/step floor.
                dimension_semantics=("parallel",),
                vmem_limit_bytes=vmem_limit),
        )(x_in, w_stack, p_stack)

    try:
        out = _call(True)
    except Exception:
        # Fallback if this JAX/Mosaic build rejects single-buffered specs.
        out = _call(False)

    return out[:B, :dims[-1]]


def _reference_forward(x, w_stack, p_stack, dims, eps=1e-5):
    """Pure-JAX reference with the same bf16 MXU hand-off between layers."""
    dims = tuple(int(d) for d in dims)
    num_layers = len(dims) - 1
    h = x.astype(w_stack.dtype).astype(jnp.float32)
    for l in range(num_layers):
        din, dout = dims[l], dims[l + 1]
        w = w_stack[l, :din, :dout].astype(jnp.float32)
        b = p_stack[l, 0, :dout]
        g = p_stack[l, 1, :dout]
        be = p_stack[l, 2, :dout]
        y = h @ w + b
        mean = jnp.mean(y, axis=-1, keepdims=True)
        var = jnp.mean((y - mean) ** 2, axis=-1, keepdims=True)
        y = (y - mean) * lax.rsqrt(var + eps) * g + be
        y = jnp.maximum(y, 0.0)
        h = y.astype(w_stack.dtype).astype(jnp.float32) if l + 1 < num_layers else y
    return h


if __name__ == "__main__":
    # ClusterEncoder(dims=[32, 64, 48, 16]) at a small batch -> single grid step.
    dims = [32, 64, 48, 16]
    batch = 16

    key = jax.random.PRNGKey(0)
    key, xk = jax.random.split(key)
    x = jax.random.normal(xk, (batch, dims[0]), dtype=jnp.float32)

    w_stack, p_stack = init_cluster_encoder_params(dims, key)

    z = cluster_encoder_forward(x, w_stack, p_stack, dims)
    jax.block_until_ready(z)

    assert z.shape == (batch, dims[-1]), z.shape
    zf = z.astype(jnp.float32)
    assert bool(jnp.all(jnp.isfinite(zf)))
    assert bool(jnp.all(zf >= 0.0))                 # final ReLU

    z_ref = _reference_forward(x, w_stack, p_stack, dims)
    max_diff = float(jnp.max(jnp.abs(zf - z_ref)))
    assert max_diff < 5e-2, max_diff                # bf16 output quantization bound

    print("KERNEL_OK")
</pallas_src>

<mosaic_0001>
module attributes {stable_mosaic.version = 11 : i64} {
  func.func @_encoder_kernel(%arg0: i32, %arg1: memref<16x32xf32, #tpu.memory_space<vmem>>, %arg2: memref<3x128x128xbf16, #tpu.memory_space<vmem>>, %arg3: memref<3x8x128xf32, #tpu.memory_space<vmem>>, %arg4: memref<16x128xbf16, #tpu.memory_space<vmem>>) attributes {dimension_semantics = [#tpu.dimension_semantics<parallel>], iteration_bounds = array<i64: 1>, scalar_prefetch = 0 : i64, scratch_operands = 0 : i64, tpu.core_type = #tpu.core_type<tc>, window_params = [{transform_indices = @transform_0, window_bounds = array<i64: 16, 32>}, {pipeline_mode = #tpu.pipeline_mode<synchronous>, transform_indices = @transform_1, window_bounds = array<i64: 3, 128, 128>}, {pipeline_mode = #tpu.pipeline_mode<synchronous>, transform_indices = @transform_2, window_bounds = array<i64: 3, 8, 128>}, {transform_indices = @transform_3, window_bounds = array<i64: 16, 128>}]} {
    %c0 = arith.constant 0 : index
    %c0_0 = arith.constant 0 : index
    %0 = vector.load %arg1[%c0, %c0_0] : memref<16x32xf32, #tpu.memory_space<vmem>>, vector<16x32xf32>
    %1 = arith.truncf %0 : vector<16x32xf32> to vector<16x32xbf16>
    %c0_1 = arith.constant 0 : index
    %c0_2 = arith.constant 0 : index
    %c0_3 = arith.constant 0 : index
    %2 = vector.load %arg2[%c0_1, %c0_2, %c0_3] : memref<3x128x128xbf16, #tpu.memory_space<vmem>>, vector<1x32x128xbf16>
    %3 = vector.shape_cast %2 : vector<1x32x128xbf16> to vector<32x128xbf16>
    %cst = arith.constant dense<0.000000e+00> : vector<16x128xf32>
    %4 = tpu.matmul %1, %3, %cst {dimension_numbers = #tpu.dot_dimension_numbers<[1], [0], [0], [1], [0, 0, 1, 1], [], []>} : vector<16x32xbf16>, vector<32x128xbf16>, vector<16x128xf32> -> vector<16x128xf32>
    %c0_4 = arith.constant 0 : index
    %c0_5 = arith.constant 0 : index
    %c0_6 = arith.constant 0 : index
    %5 = vector.load %arg3[%c0_4, %c0_5, %c0_6] : memref<3x8x128xf32, #tpu.memory_space<vmem>>, vector<1x8x128xf32>
    %6 = vector.shape_cast %5 : vector<1x8x128xf32> to vector<8x128xf32>
    %7 = vector.extract_strided_slice %6 {offsets = [0, 0], sizes = [1, 128], strides = [1, 1]} : vector<8x128xf32> to vector<1x128xf32>
    %8 = vector.broadcast %7 : vector<1x128xf32> to vector<16x128xf32>
    %9 = arith.addf %4, %8 : vector<16x128xf32>
    %10 = vector.extract_strided_slice %6 {offsets = [3, 0], sizes = [1, 128], strides = [1, 1]} : vector<8x128xf32> to vector<1x128xf32>
    %11 = vector.broadcast %10 : vector<1x128xf32> to vector<16x128xf32>
    %12 = arith.mulf %9, %11 : vector<16x128xf32>
    %cst_7 = arith.constant dense<0.000000e+00> : vector<16xf32>
    %13 = vector.multi_reduction <add>, %12, %cst_7 [1] : vector<16x128xf32> to vector<16xf32>
    %14 = vector.shape_cast %13 : vector<16xf32> to vector<16x1xf32>
    %cst_8 = arith.constant 1.562500e-02 : f32
    %15 = vector.broadcast %cst_8 : f32 to vector<16x1xf32>
    %16 = arith.mulf %14, %15 : vector<16x1xf32>
    %17 = vector.broadcast %16 : vector<16x1xf32> to vector<16x128xf32>
    %18 = arith.subf %9, %17 : vector<16x128xf32>
    %19 = vector.broadcast %10 : vector<1x128xf32> to vector<16x128xf32>
    %20 = arith.mulf %18, %19 : vector<16x128xf32>
    %21 = arith.mulf %20, %20 : vector<16x128xf32>
    %cst_9 = arith.constant dense<0.000000e+00> : vector<16xf32>
    %22 = vector.multi_reduction <add>, %21, %cst_9 [1] : vector<16x128xf32> to vector<16xf32>
    %23 = vector.shape_cast %22 : vector<16xf32> to vector<16x1xf32>
    %cst_10 = arith.constant 1.562500e-02 : f32
    %24 = vector.broadcast %cst_10 : f32 to vector<16x1xf32>
    %25 = arith.mulf %23, %24 : vector<16x1xf32>
    %cst_11 = arith.constant 9.99999974E-6 : f32
    %26 = vector.broadcast %cst_11 : f32 to vector<16x1xf32>
    %27 = arith.addf %25, %26 : vector<16x1xf32>
    %28 = math.rsqrt %27 : vector<16x1xf32>
    %29 = vector.broadcast %28 : vector<16x1xf32> to vector<16x128xf32>
    %30 = arith.mulf %20, %29 : vector<16x128xf32>
    %31 = vector.extract_strided_slice %6 {offsets = [1, 0], sizes = [1, 128], strides = [1, 1]} : vector<8x128xf32> to vector<1x128xf32>
    %32 = vector.broadcast %31 : vector<1x128xf32> to vector<16x128xf32>
    %33 = arith.mulf %30, %32 : vector<16x128xf32>
    %34 = vector.extract_strided_slice %6 {offsets = [2, 0], sizes = [1, 128], strides = [1, 1]} : vector<8x128xf32> to vector<1x128xf32>
    %35 = vector.broadcast %34 : vector<1x128xf32> to vector<16x128xf32>
    %36 = arith.addf %33, %35 : vector<16x128xf32>
    %cst_12 = arith.constant 0.000000e+00 : f32
    %37 = vector.broadcast %cst_12 : f32 to vector<16x128xf32>
    %38 = arith.maximumf %36, %37 : vector<16x128xf32>
    %39 = arith.truncf %38 : vector<16x128xf32> to vector<16x128xbf16>
    %c1 = arith.constant 1 : index
    %c0_13 = arith.constant 0 : index
    %c0_14 = arith.constant 0 : index
    %40 = vector.load %arg2[%c1, %c0_13, %c0_14] : memref<3x128x128xbf16, #tpu.memory_space<vmem>>, vector<1x128x128xbf16>
    %41 = vector.shape_cast %40 : vector<1x128x128xbf16> to vector<128x128xbf16>
    %cst_15 = arith.constant dense<0.000000e+00> : vector<16x128xf32>
    %42 = tpu.matmul %39, %41, %cst_15 {dimension_numbers = #tpu.dot_dimension_numbers<[1], [0], [0], [1], [0, 0, 1, 1], [], []>} : vector<16x128xbf16>, vector<128x128xbf16>, vector<16x128xf32> -> vector<16x128xf32>
    %c1_16 = arith.constant 1 : index
    %c0_17 = arith.constant 0 : index
    %c0_18 = arith.constant 0 : index
    %43 = vector.load %arg3[%c1_16, %c0_17, %c0_18] : memref<3x8x128xf32, #tpu.memory_space<vmem>>, vector<1x8x128xf32>
    %44 = vector.shape_cast %43 : vector<1x8x128xf32> to vector<8x128xf32>
    %45 = vector.extract_strided_slice %44 {offsets = [0, 0], sizes = [1, 128], strides = [1, 1]} : vector<8x128xf32> to vector<1x128xf32>
    %46 = vector.broadcast %45 : vector<1x128xf32> to vector<16x128xf32>
    %47 = arith.addf %42, %46 : vector<16x128xf32>
    %48 = vector.extract_strided_slice %44 {offsets = [3, 0], sizes = [1, 128], strides = [1, 1]} : vector<8x128xf32> to vector<1x128xf32>
    %49 = vector.broadcast %48 : vector<1x128xf32> to vector<16x128xf32>
    %50 = arith.mulf %47, %49 : vector<16x128xf32>
    %cst_19 = arith.constant dense<0.000000e+00> : vector<16xf32>
    %51 = vector.multi_reduction <add>, %50, %cst_19 [1] : vector<16x128xf32> to vector<16xf32>
    %52 = vector.shape_cast %51 : vector<16xf32> to vector<16x1xf32>
    %cst_20 = arith.constant 0.020833334 : f32
    %53 = vector.broadcast %cst_20 : f32 to vector<16x1xf32>
    %54 = arith.mulf %52, %53 : vector<16x1xf32>
    %55 = vector.broadcast %54 : vector<16x1xf32> to vector<16x128xf32>
    %56 = arith.subf %47, %55 : vector<16x128xf32>
    %57 = vector.broadcast %48 : vector<1x128xf32> to vector<16x128xf32>
    %58 = arith.mulf %56, %57 : vector<16x128xf32>
    %59 = arith.mulf %58, %58 : vector<16x128xf32>
    %cst_21 = arith.constant dense<0.000000e+00> : vector<16xf32>
    %60 = vector.multi_reduction <add>, %59, %cst_21 [1] : vector<16x128xf32> to vector<16xf32>
    %61 = vector.shape_cast %60 : vector<16xf32> to vector<16x1xf32>
    %cst_22 = arith.constant 0.020833334 : f32
    %62 = vector.broadcast %cst_22 : f32 to vector<16x1xf32>
    %63 = arith.mulf %61, %62 : vector<16x1xf32>
    %cst_23 = arith.constant 9.99999974E-6 : f32
    %64 = vector.broadcast %cst_23 : f32 to vector<16x1xf32>
    %65 = arith.addf %63, %64 : vector<16x1xf32>
    %66 = math.rsqrt %65 : vector<16x1xf32>
    %67 = vector.broadcast %66 : vector<16x1xf32> to vector<16x128xf32>
    %68 = arith.mulf %58, %67 : vector<16x128xf32>
    %69 = vector.extract_strided_slice %44 {offsets = [1, 0], sizes = [1, 128], strides = [1, 1]} : vector<8x128xf32> to vector<1x128xf32>
    %70 = vector.broadcast %69 : vector<1x128xf32> to vector<16x128xf32>
    %71 = arith.mulf %68, %70 : vector<16x128xf32>
    %72 = vector.extract_strided_slice %44 {offsets = [2, 0], sizes = [1, 128], strides = [1, 1]} : vector<8x128xf32> to vector<1x128xf32>
    %73 = vector.broadcast %72 : vector<1x128xf32> to vector<16x128xf32>
    %74 = arith.addf %71, %73 : vector<16x128xf32>
    %cst_24 = arith.constant 0.000000e+00 : f32
    %75 = vector.broadcast %cst_24 : f32 to vector<16x128xf32>
    %76 = arith.maximumf %74, %75 : vector<16x128xf32>
    %77 = arith.truncf %76 : vector<16x128xf32> to vector<16x128xbf16>
    %c2 = arith.constant 2 : index
    %c0_25 = arith.constant 0 : index
    %c0_26 = arith.constant 0 : index
    %78 = vector.load %arg2[%c2, %c0_25, %c0_26] : memref<3x128x128xbf16, #tpu.memory_space<vmem>>, vector<1x128x128xbf16>
    %79 = vector.shape_cast %78 : vector<1x128x128xbf16> to vector<128x128xbf16>
    %cst_27 = arith.constant dense<0.000000e+00> : vector<16x128xf32>
    %80 = tpu.matmul %77, %79, %cst_27 {dimension_numbers = #tpu.dot_dimension_numbers<[1], [0], [0], [1], [0, 0, 1, 1], [], []>} : vector<16x128xbf16>, vector<128x128xbf16>, vector<16x128xf32> -> vector<16x128xf32>
    %c2_28 = arith.constant 2 : index
    %c0_29 = arith.constant 0 : index
    %c0_30 = arith.constant 0 : index
    %81 = vector.load %arg3[%c2_28, %c0_29, %c0_30] : memref<3x8x128xf32, #tpu.memory_space<vmem>>, vector<1x8x128xf32>
    %82 = vector.shape_cast %81 : vector<1x8x128xf32> to vector<8x128xf32>
    %83 = vector.extract_strided_slice %82 {offsets = [0, 0], sizes = [1, 128], strides = [1, 1]} : vector<8x128xf32> to vector<1x128xf32>
    %84 = vector.broadcast %83 : vector<1x128xf32> to vector<16x128xf32>
    %85 = arith.addf %80, %84 : vector<16x128xf32>
    %86 = vector.extract_strided_slice %82 {offsets = [3, 0], sizes = [1, 128], strides = [1, 1]} : vector<8x128xf32> to vector<1x128xf32>
    %87 = vector.broadcast %86 : vector<1x128xf32> to vector<16x128xf32>
    %88 = arith.mulf %85, %87 : vector<16x128xf32>
    %cst_31 = arith.constant dense<0.000000e+00> : vector<16xf32>
    %89 = vector.multi_reduction <add>, %88, %cst_31 [1] : vector<16x128xf32> to vector<16xf32>
    %90 = vector.shape_cast %89 : vector<16xf32> to vector<16x1xf32>
    %cst_32 = arith.constant 6.250000e-02 : f32
    %91 = vector.broadcast %cst_32 : f32 to vector<16x1xf32>
    %92 = arith.mulf %90, %91 : vector<16x1xf32>
    %93 = vector.broadcast %92 : vector<16x1xf32> to vector<16x128xf32>
    %94 = arith.subf %85, %93 : vector<16x128xf32>
    %95 = vector.broadcast %86 : vector<1x128xf32> to vector<16x128xf32>
    %96 = arith.mulf %94, %95 : vector<16x128xf32>
    %97 = arith.mulf %96, %96 : vector<16x128xf32>
    %cst_33 = arith.constant dense<0.000000e+00> : vector<16xf32>
    %98 = vector.multi_reduction <add>, %97, %cst_33 [1] : vector<16x128xf32> to vector<16xf32>
    %99 = vector.shape_cast %98 : vector<16xf32> to vector<16x1xf32>
    %cst_34 = arith.constant 6.250000e-02 : f32
    %100 = vector.broadcast %cst_34 : f32 to vector<16x1xf32>
    %101 = arith.mulf %99, %100 : vector<16x1xf32>
    %cst_35 = arith.constant 9.99999974E-6 : f32
    %102 = vector.broadcast %cst_35 : f32 to vector<16x1xf32>
    %103 = arith.addf %101, %102 : vector<16x1xf32>
    %104 = math.rsqrt %103 : vector<16x1xf32>
    %105 = vector.broadcast %104 : vector<16x1xf32> to vector<16x128xf32>
    %106 = arith.mulf %96, %105 : vector<16x128xf32>
    %107 = vector.extract_strided_slice %82 {offsets = [1, 0], sizes = [1, 128], strides = [1, 1]} : vector<8x128xf32> to vector<1x128xf32>
    %108 = vector.broadcast %107 : vector<1x128xf32> to vector<16x128xf32>
    %109 = arith.mulf %106, %108 : vector<16x128xf32>
    %110 = vector.extract_strided_slice %82 {offsets = [2, 0], sizes = [1, 128], strides = [1, 1]} : vector<8x128xf32> to vector<1x128xf32>
    %111 = vector.broadcast %110 : vector<1x128xf32> to vector<16x128xf32>
    %112 = arith.addf %109, %111 : vector<16x128xf32>
    %cst_36 = arith.constant 0.000000e+00 : f32
    %113 = vector.broadcast %cst_36 : f32 to vector<16x128xf32>
    %114 = arith.maximumf %112, %113 : vector<16x128xf32>
    %115 = arith.truncf %114 : vector<16x128xf32> to vector<16x128xbf16>
    %c0_37 = arith.constant 0 : index
    %c0_38 = arith.constant 0 : index
    %116 = vector.load %arg4[%c0_37, %c0_38] : memref<16x128xbf16, #tpu.memory_space<vmem>>, vector<16x128xbf16>
    tpu.vector_store %arg4[%c0_37, %c0_38], %115 {strides = array<i32>} : memref<16x128xbf16, #tpu.memory_space<vmem>>, vector<16x128xbf16>,
    return
  }
  func.func @transform_0(%arg0: i32) -> (i32, i32) {
    %c0_i32 = arith.constant 0 : i32
    %c0_i32_0 = arith.constant 0 : i32
    return %arg0, %c0_i32 : i32, i32
  }
  func.func @transform_1(%arg0: i32) -> (i32, i32, i32) {
    %c0_i32 = arith.constant 0 : i32
    %c0_i32_0 = arith.constant 0 : i32
    %c0_i32_1 = arith.constant 0 : i32
    %c0_i32_2 = arith.constant 0 : i32
    return %c0_i32, %c0_i32_0, %c0_i32_1 : i32, i32, i32
  }
  func.func @transform_2(%arg0: i32) -> (i32, i32, i32) {
    %c0_i32 = arith.constant 0 : i32
    %c0_i32_0 = arith.constant 0 : i32
    %c0_i32_1 = arith.constant 0 : i32
    %c0_i32_2 = arith.constant 0 : i32
    return %c0_i32, %c0_i32_0, %c0_i32_1 : i32, i32, i32
  }
  func.func @transform_3(%arg0: i32) -> (i32, i32) {
    %c0_i32 = arith.constant 0 : i32
    %c0_i32_0 = arith.constant 0 : i32
    return %arg0, %c0_i32 : i32, i32
  }
}

module attributes {stable_mosaic.version = 11 : i64} {
  func.func @_encoder_kernel(%arg0: i32, %arg1: memref<16x32xf32, #tpu.memory_space<vmem>>, %arg2: memref<3x128x128xbf16, #tpu.memory_space<vmem>>, %arg3: memref<3x8x128xf32, #tpu.memory_space<vmem>>, %arg4: memref<16x128xbf16, #tpu.memory_space<vmem>>) attributes {dimension_semantics = [#tpu.dimension_semantics<parallel>], iteration_bounds = array<i64: 1>, scalar_prefetch = 0 : i64, scratch_operands = 0 : i64, tpu.core_type = #tpu.core_type<tc>, window_params = [{transform_indices = @transform_0, window_bounds = array<i64: 16, 32>}, {pipeline_mode = #tpu.pipeline_mode<synchronous>, transform_indices = @transform_1, window_bounds = array<i64: 3, 128, 128>}, {pipeline_mode = #tpu.pipeline_mode<synchronous>, transform_indices = @transform_2, window_bounds = array<i64: 3, 8, 128>}, {transform_indices = @transform_3, window_bounds = array<i64: 16, 128>}]} {
    %c0 = arith.constant 0 : index
    %c0_0 = arith.constant 0 : index
    %0 = vector.load %arg1[%c0, %c0_0] : memref<16x32xf32, #tpu.memory_space<vmem>>, vector<16x32xf32>
    %1 = arith.truncf %0 : vector<16x32xf32> to vector<16x32xbf16>
    %c0_1 = arith.constant 0 : index
    %c0_2 = arith.constant 0 : index
    %c0_3 = arith.constant 0 : index
    %2 = vector.load %arg2[%c0_1, %c0_2, %c0_3] : memref<3x128x128xbf16, #tpu.memory_space<vmem>>, vector<1x32x128xbf16>
    %3 = vector.shape_cast %2 : vector<1x32x128xbf16> to vector<32x128xbf16>
    %cst = arith.constant dense<0.000000e+00> : vector<16x128xf32>
    %4 = tpu.matmul %1, %3, %cst {dimension_numbers = #tpu.dot_dimension_numbers<[1], [0], [0], [1], [0, 0, 1, 1], [], []>} : vector<16x32xbf16>, vector<32x128xbf16>, vector<16x128xf32> -> vector<16x128xf32>
    %c0_4 = arith.constant 0 : index
    %c0_5 = arith.constant 0 : index
    %c0_6 = arith.constant 0 : index
    %5 = vector.load %arg3[%c0_4, %c0_5, %c0_6] : memref<3x8x128xf32, #tpu.memory_space<vmem>>, vector<1x8x128xf32>
    %6 = vector.shape_cast %5 : vector<1x8x128xf32> to vector<8x128xf32>
    %7 = vector.extract_strided_slice %6 {offsets = [0, 0], sizes = [1, 128], strides = [1, 1]} : vector<8x128xf32> to vector<1x128xf32>
    %8 = vector.broadcast %7 : vector<1x128xf32> to vector<16x128xf32>
    %9 = arith.addf %4, %8 : vector<16x128xf32>
    %10 = vector.extract_strided_slice %6 {offsets = [3, 0], sizes = [1, 128], strides = [1, 1]} : vector<8x128xf32> to vector<1x128xf32>
    %11 = vector.broadcast %10 : vector<1x128xf32> to vector<16x128xf32>
    %12 = arith.mulf %9, %11 : vector<16x128xf32>
    %cst_7 = arith.constant dense<0.000000e+00> : vector<16xf32>
    %13 = vector.multi_reduction <add>, %12, %cst_7 [1] : vector<16x128xf32> to vector<16xf32>
    %14 = vector.shape_cast %13 : vector<16xf32> to vector<16x1xf32>
    %cst_8 = arith.constant 1.562500e-02 : f32
    %15 = vector.broadcast %cst_8 : f32 to vector<16x1xf32>
    %16 = arith.mulf %14, %15 : vector<16x1xf32>
    %17 = vector.broadcast %16 : vector<16x1xf32> to vector<16x128xf32>
    %18 = arith.subf %9, %17 : vector<16x128xf32>
    %19 = vector.broadcast %10 : vector<1x128xf32> to vector<16x128xf32>
    %20 = arith.mulf %18, %19 : vector<16x128xf32>
    %21 = arith.mulf %20, %20 : vector<16x128xf32>
    %cst_9 = arith.constant dense<0.000000e+00> : vector<16xf32>
    %22 = vector.multi_reduction <add>, %21, %cst_9 [1] : vector<16x128xf32> to vector<16xf32>
    %23 = vector.shape_cast %22 : vector<16xf32> to vector<16x1xf32>
    %cst_10 = arith.constant 1.562500e-02 : f32
    %24 = vector.broadcast %cst_10 : f32 to vector<16x1xf32>
    %25 = arith.mulf %23, %24 : vector<16x1xf32>
    %cst_11 = arith.constant 9.99999974E-6 : f32
    %26 = vector.broadcast %cst_11 : f32 to vector<16x1xf32>
    %27 = arith.addf %25, %26 : vector<16x1xf32>
    %28 = math.rsqrt %27 : vector<16x1xf32>
    %29 = vector.broadcast %28 : vector<16x1xf32> to vector<16x128xf32>
    %30 = arith.mulf %20, %29 : vector<16x128xf32>
    %31 = vector.extract_strided_slice %6 {offsets = [1, 0], sizes = [1, 128], strides = [1, 1]} : vector<8x128xf32> to vector<1x128xf32>
    %32 = vector.broadcast %31 : vector<1x128xf32> to vector<16x128xf32>
    %33 = arith.mulf %30, %32 : vector<16x128xf32>
    %34 = vector.extract_strided_slice %6 {offsets = [2, 0], sizes = [1, 128], strides = [1, 1]} : vector<8x128xf32> to vector<1x128xf32>
    %35 = vector.broadcast %34 : vector<1x128xf32> to vector<16x128xf32>
    %36 = arith.addf %33, %35 : vector<16x128xf32>
    %cst_12 = arith.constant 0.000000e+00 : f32
    %37 = vector.broadcast %cst_12 : f32 to vector<16x128xf32>
    %38 = arith.maximumf %36, %37 : vector<16x128xf32>
    %39 = arith.truncf %38 : vector<16x128xf32> to vector<16x128xbf16>
    %c1 = arith.constant 1 : index
    %c0_13 = arith.constant 0 : index
    %c0_14 = arith.constant 0 : index
    %40 = vector.load %arg2[%c1, %c0_13, %c0_14] : memref<3x128x128xbf16, #tpu.memory_space<vmem>>, vector<1x128x128xbf16>
    %41 = vector.shape_cast %40 : vector<1x128x128xbf16> to vector<128x128xbf16>
    %cst_15 = arith.constant dense<0.000000e+00> : vector<16x128xf32>
    %42 = tpu.matmul %39, %41, %cst_15 {dimension_numbers = #tpu.dot_dimension_numbers<[1], [0], [0], [1], [0, 0, 1, 1], [], []>} : vector<16x128xbf16>, vector<128x128xbf16>, vector<16x128xf32> -> vector<16x128xf32>
    %c1_16 = arith.constant 1 : index
    %c0_17 = arith.constant 0 : index
    %c0_18 = arith.constant 0 : index
    %43 = vector.load %arg3[%c1_16, %c0_17, %c0_18] : memref<3x8x128xf32, #tpu.memory_space<vmem>>, vector<1x8x128xf32>
    %44 = vector.shape_cast %43 : vector<1x8x128xf32> to vector<8x128xf32>
    %45 = vector.extract_strided_slice %44 {offsets = [0, 0], sizes = [1, 128], strides = [1, 1]} : vector<8x128xf32> to vector<1x128xf32>
    %46 = vector.broadcast %45 : vector<1x128xf32> to vector<16x128xf32>
    %47 = arith.addf %42, %46 : vector<16x128xf32>
    %48 = vector.extract_strided_slice %44 {offsets = [3, 0], sizes = [1, 128], strides = [1, 1]} : vector<8x128xf32> to vector<1x128xf32>
    %49 = vector.broadcast %48 : vector<1x128xf32> to vector<16x128xf32>
    %50 = arith.mulf %47, %49 : vector<16x128xf32>
    %cst_19 = arith.constant dense<0.000000e+00> : vector<16xf32>
    %51 = vector.multi_reduction <add>, %50, %cst_19 [1] : vector<16x128xf32> to vector<16xf32>
    %52 = vector.shape_cast %51 : vector<16xf32> to vector<16x1xf32>
    %cst_20 = arith.constant 0.020833334 : f32
    %53 = vector.broadcast %cst_20 : f32 to vector<16x1xf32>
    %54 = arith.mulf %52, %53 : vector<16x1xf32>
    %55 = vector.broadcast %54 : vector<16x1xf32> to vector<16x128xf32>
    %56 = arith.subf %47, %55 : vector<16x128xf32>
    %57 = vector.broadcast %48 : vector<1x128xf32> to vector<16x128xf32>
    %58 = arith.mulf %56, %57 : vector<16x128xf32>
    %59 = arith.mulf %58, %58 : vector<16x128xf32>
    %cst_21 = arith.constant dense<0.000000e+00> : vector<16xf32>
    %60 = vector.multi_reduction <add>, %59, %cst_21 [1] : vector<16x128xf32> to vector<16xf32>
    %61 = vector.shape_cast %60 : vector<16xf32> to vector<16x1xf32>
    %cst_22 = arith.constant 0.020833334 : f32
    %62 = vector.broadcast %cst_22 : f32 to vector<16x1xf32>
    %63 = arith.mulf %61, %62 : vector<16x1xf32>
    %cst_23 = arith.constant 9.99999974E-6 : f32
    %64 = vector.broadcast %cst_23 : f32 to vector<16x1xf32>
    %65 = arith.addf %63, %64 : vector<16x1xf32>
    %66 = math.rsqrt %65 : vector<16x1xf32>
    %67 = vector.broadcast %66 : vector<16x1xf32> to vector<16x128xf32>
    %68 = arith.mulf %58, %67 : vector<16x128xf32>
    %69 = vector.extract_strided_slice %44 {offsets = [1, 0], sizes = [1, 128], strides = [1, 1]} : vector<8x128xf32> to vector<1x128xf32>
    %70 = vector.broadcast %69 : vector<1x128xf32> to vector<16x128xf32>
    %71 = arith.mulf %68, %70 : vector<16x128xf32>
    %72 = vector.extract_strided_slice %44 {offsets = [2, 0], sizes = [1, 128], strides = [1, 1]} : vector<8x128xf32> to vector<1x128xf32>
    %73 = vector.broadcast %72 : vector<1x128xf32> to vector<16x128xf32>
    %74 = arith.addf %71, %73 : vector<16x128xf32>
    %cst_24 = arith.constant 0.000000e+00 : f32
    %75 = vector.broadcast %cst_24 : f32 to vector<16x128xf32>
    %76 = arith.maximumf %74, %75 : vector<16x128xf32>
    %77 = arith.truncf %76 : vector<16x128xf32> to vector<16x128xbf16>
    %c2 = arith.constant 2 : index
    %c0_25 = arith.constant 0 : index
    %c0_26 = arith.constant 0 : index
    %78 = vector.load %arg2[%c2, %c0_25, %c0_26] : memref<3x128x128xbf16, #tpu.memory_space<vmem>>, vector<1x128x128xbf16>
    %79 = vector.shape_cast %78 : vector<1x128x128xbf16> to vector<128x128xbf16>
    %cst_27 = arith.constant dense<0.000000e+00> : vector<16x128xf32>
    %80 = tpu.matmul %77, %79, %cst_27 {dimension_numbers = #tpu.dot_dimension_numbers<[1], [0], [0], [1], [0, 0, 1, 1], [], []>} : vector<16x128xbf16>, vector<128x128xbf16>, vector<16x128xf32> -> vector<16x128xf32>
    %c2_28 = arith.constant 2 : index
    %c0_29 = arith.constant 0 : index
    %c0_30 = arith.constant 0 : index
    %81 = vector.load %arg3[%c2_28, %c0_29, %c0_30] : memref<3x8x128xf32, #tpu.memory_space<vmem>>, vector<1x8x128xf32>
    %82 = vector.shape_cast %81 : vector<1x8x128xf32> to vector<8x128xf32>
    %83 = vector.extract_strided_slice %82 {offsets = [0, 0], sizes = [1, 128], strides = [1, 1]} : vector<8x128xf32> to vector<1x128xf32>
    %84 = vector.broadcast %83 : vector<1x128xf32> to vector<16x128xf32>
    %85 = arith.addf %80, %84 : vector<16x128xf32>
    %86 = vector.extract_strided_slice %82 {offsets = [3, 0], sizes = [1, 128], strides = [1, 1]} : vector<8x128xf32> to vector<1x128xf32>
    %87 = vector.broadcast %86 : vector<1x128xf32> to vector<16x128xf32>
    %88 = arith.mulf %85, %87 : vector<16x128xf32>
    %cst_31 = arith.constant dense<0.000000e+00> : vector<16xf32>
    %89 = vector.multi_reduction <add>, %88, %cst_31 [1] : vector<16x128xf32> to vector<16xf32>
    %90 = vector.shape_cast %89 : vector<16xf32> to vector<16x1xf32>
    %cst_32 = arith.constant 6.250000e-02 : f32
    %91 = vector.broadcast %cst_32 : f32 to vector<16x1xf32>
    %92 = arith.mulf %90, %91 : vector<16x1xf32>
    %93 = vector.broadcast %92 : vector<16x1xf32> to vector<16x128xf32>
    %94 = arith.subf %85, %93 : vector<16x128xf32>
    %95 = vector.broadcast %86 : vector<1x128xf32> to vector<16x128xf32>
    %96 = arith.mulf %94, %95 : vector<16x128xf32>
    %97 = arith.mulf %96, %96 : vector<16x128xf32>
    %cst_33 = arith.constant dense<0.000000e+00> : vector<16xf32>
    %98 = vector.multi_reduction <add>, %97, %cst_33 [1] : vector<16x128xf32> to vector<16xf32>
    %99 = vector.shape_cast %98 : vector<16xf32> to vector<16x1xf32>
    %cst_34 = arith.constant 6.250000e-02 : f32
    %100 = vector.broadcast %cst_34 : f32 to vector<16x1xf32>
    %101 = arith.mulf %99, %100 : vector<16x1xf32>
    %cst_35 = arith.constant 9.99999974E-6 : f32
    %102 = vector.broadcast %cst_35 : f32 to vector<16x1xf32>
    %103 = arith.addf %101, %102 : vector<16x1xf32>
    %104 = math.rsqrt %103 : vector<16x1xf32>
    %105 = vector.broadcast %104 : vector<16x1xf32> to vector<16x128xf32>
    %106 = arith.mulf %96, %105 : vector<16x128xf32>
    %107 = vector.extract_strided_slice %82 {offsets = [1, 0], sizes = [1, 128], strides = [1, 1]} : vector<8x128xf32> to vector<1x128xf32>
    %108 = vector.broadcast %107 : vector<1x128xf32> to vector<16x128xf32>
    %109 = arith.mulf %106, %108 : vector<16x128xf32>
    %110 = vector.extract_strided_slice %82 {offsets = [2, 0], sizes = [1, 128], strides = [1, 1]} : vector<8x128xf32> to vector<1x128xf32>
    %111 = vector.broadcast %110 : vector<1x128xf32> to vector<16x128xf32>
    %112 = arith.addf %109, %111 : vector<16x128xf32>
    %cst_36 = arith.constant 0.000000e+00 : f32
    %113 = vector.broadcast %cst_36 : f32 to vector<16x128xf32>
    %114 = arith.maximumf %112, %113 : vector<16x128xf32>
    %115 = arith.truncf %114 : vector<16x128xf32> to vector<16x128xbf16>
    %c0_37 = arith.constant 0 : index
    %c0_38 = arith.constant 0 : index
    %116 = vector.load %arg4[%c0_37, %c0_38] : memref<16x128xbf16, #tpu.memory_space<vmem>>, vector<16x128xbf16>
    tpu.vector_store %arg4[%c0_37, %c0_38], %115 {strides = array<i32>} : memref<16x128xbf16, #tpu.memory_space<vmem>>, vector<16x128xbf16>,
    return
  }
  func.func @transform_0(%arg0: i32) -> (i32, i32) {
    %c0_i32 = arith.constant 0 : i32
    %c0_i32_0 = arith.constant 0 : i32
    return %arg0, %c0_i32 : i32, i32
  }
  func.func @transform_1(%arg0: i32) -> (i32, i32, i32) {
    %c0_i32 = arith.constant 0 : i32
    %c0_i32_0 = arith.constant 0 : i32
    %c0_i32_1 = arith.constant 0 : i32
    %c0_i32_2 = arith.constant 0 : i32
    return %c0_i32, %c0_i32_0, %c0_i32_1 : i32, i32, i32
  }
  func.func @transform_2(%arg0: i32) -> (i32, i32, i32) {
    %c0_i32 = arith.constant 0 : i32
    %c0_i32_0 = arith.constant 0 : i32
    %c0_i32_1 = arith.constant 0 : i32
    %c0_i32_2 = arith.constant 0 : i32
    return %c0_i32, %c0_i32_0, %c0_i32_1 : i32, i32, i32
  }
  func.func @transform_3(%arg0: i32) -> (i32, i32) {
    %c0_i32 = arith.constant 0 : i32
    %c0_i32_0 = arith.constant 0 : i32
    return %arg0, %c0_i32 : i32, i32
  }
}

</mosaic_0001>

<bundles_post_ra>
// kernel: tpu_custom_call.1
= control target key start
LH: loop header
LB: loop body
LE: loop exit
PB: predicated region body
PF: predicated region fallthrough
CT: control target
= control target key end

     0   :  { %8 = vsyncpa [#allocation3], 0  ;;  %s874_s0 = inlined_call_operand.hbm [shape: f32[16,32], index: 0, kind: input, shape index: {}]   ;;  %s875_s1 = inlined_call_operand.hbm [shape: bf16[3,128,128], index: 1, kind: input, shape index: {}]   ;;  %s876_s2 = inlined_call_operand.hbm [shape: f32[3,8,128], index: 2, kind: input, shape index: {}]   ;;  %s877_s3 = inlined_call_operand.hbm [shape: bf16[16,128], index: 3, kind: output, shape index: {}]  }
   0x1   :  { %9 = vsyncpa [#allocation6], 0 }
   0x2   :  { %10 = vsyncpa [#allocation4], 0  ;;  %s743_s12 = smov [#allocation5]   ;;  %s649_s16 = scalar_lea.hbm %s875_s1, 3072 }
   0x3   :  { %s28_s13 = sshll.u32 %s743_s12, 4  ;;  %p650_p0 = scmp.ne.s32.totalorder %s875_s1, %s649_s16  ;;  %s29_s13 = int_to_ptr.vmem [resolvable:$true] %s28_s13 }
   0x4   :  { %p653_p1 = scmp.lt.u32.totalorder %s649_s16, %s875_s1 }
   0x6   :  { %p655_p2 = pnand %p653_p1, %p650_p0 }
   0x8   :  { %658 = shalt.err (!%p655_p2)
}
   0x9   :  { %s659_s21 = scalar_lea.vmem %s29_s13, 3072  ;;  %p664_p4 = scmp.lt.s32.totalorder %s29_s13, %s29_s13 }
   0xa   :  { %p660_p3 = scmp.ne.s32.totalorder %s29_s13, %s659_s21  ;;  %p665_p5 = scmp.lt.s32.totalorder %s659_s21, %s659_s21 }
   0xc   :  { %p666_p6 = por %p665_p5, %p664_p4 }
   0xe   :  { %p667_p7 = pnand %p666_p6, %p660_p3 }
  0x10   :  { %670 = shalt.err (!%p667_p7)
}
  0x11   :  { %s744_s22 = smov 64   ;;  %s745_s23 = smov 4  }
  0x12   :  { %34 = dma.hbm_to_vmem [thread:$0]  %s875_s1, 3072, %s29_s13, [#allocation6], %s744_s22, %s744_s22, %s745_s23  }
  0x13   :  { %s746_s26 = smov [#allocation2]   ;;  %s671_s30 = scalar_lea.hbm %s874_s0, 256 }
  0x14   :  { %s16_s27 = sshll.u32 %s746_s26, 4  ;;  %p672_p8 = scmp.ne.s32.totalorder %s874_s0, %s671_s30  ;;  %s17_s27 = int_to_ptr.vmem [resolvable:$true] %s16_s27 }
  0x15   :  { %p675_p9 = scmp.lt.u32.totalorder %s671_s30, %s874_s0 }
  0x17   :  { %p677_p10 = pnand %p675_p9, %p672_p8 }
  0x19   :  { %680 = shalt.err (!%p677_p10)
}
  0x1a   :  { %s681_s8 = scalar_lea.vmem %s17_s27, 256  ;;  %p686_p12 = scmp.lt.s32.totalorder %s17_s27, %s17_s27 }
  0x1b   :  { %p682_p11 = scmp.ne.s32.totalorder %s17_s27, %s681_s8  ;;  %p687_p13 = scmp.lt.s32.totalorder %s681_s8, %s681_s8 }
  0x1d   :  { %p688_p0 = por %p687_p13, %p686_p12 }
  0x1f   :  { %p689_p1 = pnand %p688_p0, %p682_p11 }
  0x21   :  { %692 = shalt.err (!%p689_p1)
}
  0x22   :  { %s747_s1 = smov 128   ;;  %s748_s9 = smov 8  }
  0x23   :  { %22 = dma.hbm_to_vmem [thread:$0]  %s874_s0, 256, %s17_s27, [#allocation3], %s747_s1, %s747_s1, %s748_s9  }
  0x24   :  { %s749_s12 = smov [#allocation7]   ;;  %s693_s16 = scalar_lea.hbm %s876_s2, 384 }
  0x25   :  { %s40_s13 = sshll.u32 %s749_s12, 4  ;;  %p694_p2 = scmp.ne.s32.totalorder %s876_s2, %s693_s16  ;;  %s41_s13 = int_to_ptr.vmem [resolvable:$true] %s40_s13 }
  0x26   :  { %p697_p3 = scmp.lt.u32.totalorder %s693_s16, %s876_s2 }
  0x28   :  { %p699_p4 = pnand %p697_p3, %p694_p2 }
  0x2a   :  { %702 = shalt.err (!%p699_p4)
}
  0x2b   :  { %s703_s21 = scalar_lea.vmem %s41_s13, 384  ;;  %p708_p6 = scmp.lt.s32.totalorder %s41_s13, %s41_s13 }
  0x2c   :  { %p704_p5 = scmp.ne.s32.totalorder %s41_s13, %s703_s21  ;;  %p709_p7 = scmp.lt.s32.totalorder %s703_s21, %s703_s21 }
  0x2e   :  { %p710_p8 = por %p709_p7, %p708_p6 }
  0x30   :  { %p711_p9 = pnand %p710_p8, %p704_p5 }
  0x32   :  { %714 = shalt.err (!%p711_p9)
}
  0x33   :  { %46 = dma.hbm_to_vmem [thread:$0]  %s876_s2, 384, %s41_s13, [#allocation6], %s747_s1, %s747_s1, %s748_s9  }
  0x34   :  { %737 = dma.done.wait [#allocation3], 256  }
  0x35   :  { %738 = vsyncadd [#allocation3], 4294967040 }
  0x36   :  { %739 = dma.done.wait [#allocation6], 3456  }
  0x37   :  { %740 = vsyncadd [#allocation6], 4294963840  ;;  %v750_v0 = vmov 0.0   ;;  %vm751_vm0 = vmmov 0   ;;  %v619_v1 = vld [vmem:[#allocation5] sm:$0xff]   ;;  %v620_v2 = vld [vmem:[#allocation5 + $0x8] sm:$0xff]   ;;  %v65_v6 = vlaneseq }
  0x38   :  { %561 = vmatprep.subr.bf16.mxu0 %v750_v0  ;;  %565 = vmatprep.mubr.msk.bf16.mxu0 %vm751_vm0, %v750_v0  ;;  %v57_v3 = vld [vmem:[#allocation2] sm:$0xff]  ;;  %v58_v4 = vld [vmem:[#allocation2 + $0x8] sm:$0xff]  ;;  %vm81_vm1 = vcmask 261120   ;;  %v821_v9 = vld [vmem:[#allocation7] sm:$0xff]  ;;  %s752_s2 = smov [#allocation8]  }
  0x39   :  { %569 = vmatprep.subr.bf16.mxu1 %v750_v0  ;;  %585 = vmatprep.mubr.msk.bf16.mxu1 %vm751_vm0, %v750_v0  ;;  %v59_v5 = vpack.c.bf16 %v58_v4, %v57_v3  ;;  %v66_v7 = vshrl.u32 %v65_v6, 7  ;;  %v621_v21 = vld [vmem:[#allocation5 + $0x40] sm:$0xff]   ;;  %v622_v32 = vld [vmem:[#allocation5 + $0x48] sm:$0xff]   ;;  %v623_v33 = vld [vmem:[#allocation5 + $0x50] sm:$0xff]   ;;  %s499_s25 = sshll.u32 %s752_s2, 4  ;;  %s500_s25 = int_to_ptr.vmem [resolvable:$true] %s499_s25 }
  0x3a   :  { %562 = vmatpush3.bf16.msra.mxu0 %v619_v1  ;;  %570 = vmatpush3.bf16.msra.mxu1 %v621_v21  ;;  %v624_v34 = vld [vmem:[#allocation5 + $0x58] sm:$0xff]   ;;  %v625_v35 = vld [vmem:[#allocation5 + $0x60] sm:$0xff]   ;;  %v626_v36 = vld [vmem:[#allocation5 + $0x68] sm:$0xff]   ;;  %s715_s26 = scalar_lea.vmem %s500_s25, 128  ;;  %p720_p11 = scmp.lt.s32.totalorder %s500_s25, %s500_s25 }
  0x3b   :  { %563 = vmatprep.subr.bf16.mxu0 %v750_v0  ;;  %v819_v8 = vsub.s32 0, %v66_v7  ;;  %v823_v10 = vsub.s32 3, %v66_v7  ;;  %571 = vmatprep.subr.bf16.mxu1 %v750_v0  ;;  %v627_v37 = vld [vmem:[#allocation5 + $0x70] sm:$0xff]   ;;  %v628_v38 = vld [vmem:[#allocation5 + $0x78] sm:$0xff]   ;;  %v836_v45 = vsub.s32 1, %v66_v7  ;;  %v840_v47 = vsub.s32 2, %v66_v7  ;;  %p716_p10 = scmp.ne.s32.totalorder %s500_s25, %s715_s26  ;;  %p721_p12 = scmp.lt.s32.totalorder %s715_s26, %s715_s26 }
  0x3c   :  { %v189_v60 = vld [vmem:[#allocation7 + $0x8] sm:$0xff] }
  0x3d   :  { %v68_v11 = vrot.slane %v821_v9, %v819_v8  ;;  %v129_v12 = vrot.slane %v821_v9, %v823_v10  ;;  %v159_v46 = vrot.slane %v821_v9, %v836_v45  ;;  %v165_v51 = vrot.slane %v821_v9, %v840_v47  ;;  %v629_v9 = vld [vmem:[#allocation5 + $0x80] sm:$0xff]   ;;  %v630_v21 = vld [vmem:[#allocation5 + $0x88] sm:$0xff]   ;;  %p722_p13 = por %p721_p12, %p720_p11 }
  0x3e   :  { %564 = vmatpush3.bf16.msra.mxu0 %v620_v2  ;;  %572 = vmatpush3.bf16.msra.mxu1 %v622_v32  ;;  %v193_v61 = vrot.slane %v189_v60, %v819_v8  ;;  %v286_v62 = vrot.slane %v189_v60, %v823_v10 }
  0x3f   :  { %589 = vmatprep.subr.bf16.mxu0 %v750_v0  ;;  %573 = vmatprep.subr.bf16.mxu1 %v750_v0  ;;  %p723_p0 = pnand %p722_p13, %p716_p10 }
  0x41   :  { %566 = vmatmul.mubr.msk.bf16.vlgmr.msra.gmra.mrb[0].mxu0 %vm81_vm1, %v59_v5 }
  0x42   :  { %605 = vmatprep.mubr.msk.bf16.mxu0 %vm751_vm0, %v750_v0  ;;  %574 = vmatpush3.bf16.msra.mxu1 %v623_v33 }
  0x43   :  { %575 = vmatprep.subr.bf16.mxu1 %v750_v0  ;;  %590 = vmatpush3.bf16.msra.mxu0 %v629_v9 }
  0x44   :  { %591 = vmatprep.subr.bf16.mxu0 %v750_v0 }
  0x46   :  { %576 = vmatpush3.bf16.msra.mxu1 %v624_v34  ;;  %v316_v34 = vrot.slane %v189_v60, %v836_v45 }
  0x47   :  { %577 = vmatprep.subr.bf16.mxu1 %v750_v0  ;;  %592 = vmatpush3.bf16.msra.mxu0 %v630_v21 }
  0x48   :  { %593 = vmatprep.subr.bf16.mxu0 %v750_v0 }
  0x4a   :  { %578 = vmatpush3.bf16.msra.mxu1 %v625_v35 }
  0x4b   :  { %579 = vmatprep.subr.bf16.mxu1 %v750_v0 }
  0x4e   :  { %580 = vmatpush3.bf16.msra.mxu1 %v626_v36  ;;  %v322_v36 = vrot.slane %v189_v60, %v840_v47 }
  0x4f   :  { %581 = vmatprep.subr.bf16.mxu1 %v750_v0 }
  0x52   :  { %582 = vmatpush3.bf16.msra.mxu1 %v627_v37 }
  0x53   :  { %583 = vmatprep.subr.bf16.mxu1 %v750_v0 }
  0x56   :  { %584 = vmatpush3.bf16.msra.mxu1 %v628_v38 }
 0x114   :  { %v119_v13 = vpop.f32.mrb[0].mxu0 }
 0x115   :  { %v120_v14 = vadd.f32 %v119_v13, %v68_v11  ;;  %v567_v15 = vpop.f32.mrb[1].mxu0 }
 0x116   :  { %v122_v16 = vpop.f32.mrb[2].mxu0 }
 0x117   :  { %v123_v17 = vadd.f32 %v122_v16, %v68_v11  ;;  %v568_v18 = vpop.f32.mrb[3].mxu0  ;;  %v130_v19 = vmul.f32 %v129_v12, %v120_v14 }
 0x119   :  { %132 = vadd.xlane.f32.xlu0 %v130_v19  ;;  %v131_v20 = vmul.f32 %v129_v12, %v123_v17 }
 0x11d   :  { %134 = vadd.xlane.f32.xlu0 %v131_v20 }
 0x1a6   :  { %v133_v22 = vpop.xlane.xlu0 %132 }
 0x1a7   :  { %v136_v23 = vmul.f32 0.015625, %v133_v22  ;;  %v631_v22 = vld [vmem:[#allocation5 + $0x90] sm:$0xff]  }
 0x1a8   :  { %594 = vmatpush3.bf16.msra.mxu0 %v631_v22 }
 0x1a9   :  { %v138_v24 = vsub.f32 %v120_v14, %v136_v23  ;;  %595 = vmatprep.subr.bf16.mxu0 %v750_v0  ;;  %v632_v23 = vld [vmem:[#allocation5 + $0x98] sm:$0xff]  }
 0x1aa   :  { %v135_v25 = vpop.xlane.xlu0 %134 }
 0x1ab   :  { %v137_v26 = vmul.f32 0.015625, %v135_v25  ;;  %v140_v27 = vmul.f32 %v138_v24, %v129_v12  ;;  %v633_v24 = vld [vmem:[#allocation5 + $0xa0] sm:$0xff]   ;;  %v634_v25 = vld [vmem:[#allocation5 + $0xa8] sm:$0xff]  }
 0x1ac   :  { %596 = vmatpush3.bf16.msra.mxu0 %v632_v23 }
 0x1ad   :  { %v139_v28 = vsub.f32 %v123_v17, %v137_v26  ;;  %v142_v29 = vmul.f32 %v140_v27, %v140_v27  ;;  %597 = vmatprep.subr.bf16.mxu0 %v750_v0  ;;  %v635_v26 = vld [vmem:[#allocation5 + $0xb0] sm:$0xff]  }
 0x1af   :  { %144 = vadd.xlane.f32.xlu1 %v142_v29  ;;  %v141_v30 = vmul.f32 %v139_v28, %v129_v12 }
 0x1b0   :  { %598 = vmatpush3.bf16.msra.mxu0 %v633_v24 }
 0x1b1   :  { %v143_v31 = vmul.f32 %v141_v30, %v141_v30  ;;  %599 = vmatprep.subr.bf16.mxu0 %v750_v0 }
 0x1b3   :  { %146 = vadd.xlane.f32.xlu1 %v143_v31 }
 0x1b4   :  { %600 = vmatpush3.bf16.msra.mxu0 %v634_v25 }
 0x1b5   :  { %601 = vmatprep.subr.bf16.mxu0 %v750_v0 }
 0x1b8   :  { %602 = vmatpush3.bf16.msra.mxu0 %v635_v26 }
 0x1b9   :  { %603 = vmatprep.subr.bf16.mxu0 %v750_v0 }
 0x23c   :  { %v145_v39 = vpop.xlane.xlu1 %144 }
 0x23d   :  { %v148_v40 = vmul.f32 0.015625, %v145_v39 }
 0x23f   :  { %v150_v41 = vadd.f32 1e-05, %v148_v40 }
 0x240   :  { %v147_v42 = vpop.xlane.xlu1 %146 }
 0x241   :  { %637 = vrsqrt.f32 %v150_v41  ;;  %v149_v43 = vmul.f32 0.015625, %v147_v42 }
 0x243   :  { %v151_v44 = vadd.f32 1e-05, %v149_v43 }
 0x245   :  { %639 = vrsqrt.f32 %v151_v44 }
 0x24b   :  { %v638_v48 = vpop.eup %637 }
 0x24c   :  { %v154_v49 = vmul.f32 %v638_v48, %v140_v27  ;;  %v636_v27 = vld [vmem:[#allocation5 + $0xb8] sm:$0xff]   ;;  %v346_v48 = vld [vmem:[#allocation7 + $0x10] sm:$0xff] }
 0x24d   :  { %604 = vmatpush3.bf16.msra.mxu0 %v636_v27 }
 0x24e   :  { %v160_v50 = vmul.f32 %v159_v46, %v154_v49  ;;  %v350_v49 = vrot.slane %v346_v48, %v819_v8 }
 0x24f   :  { %v640_v52 = vpop.eup %639 }
 0x250   :  { %v155_v53 = vmul.f32 %v640_v52, %v141_v30  ;;  %v166_v55 = vadd.f32 %v165_v51, %v160_v50  ;;  %v443_v50 = vrot.slane %v346_v48, %v823_v10 }
 0x252   :  { %v161_v54 = vmul.f32 %v159_v46, %v155_v53  ;;  %v168_v57 = vmax.f32 %v166_v55, 0.0 }
 0x254   :  { %v167_v56 = vadd.f32 %v165_v51, %v161_v54 }
 0x256   :  { %v169_v58 = vmax.f32 %v167_v56, 0.0 }
 0x258   :  { %v170_v59 = vpack.c.bf16 %v169_v58, %v168_v57 }
 0x25a   :  { %586 = vmatmul.mubr.bf16.vlgmr.msra.gmra.mrb[0].mxu1 %v170_v59 }
 0x32d   :  { %v276_v63 = vpop.f32.mrb[0].mxu1 }
 0x32e   :  { %v277_v1 = vadd.f32 %v276_v63, %v193_v61  ;;  %v587_v2 = vpop.f32.mrb[1].mxu1 }
 0x32f   :  { %v279_v3 = vpop.f32.mrb[2].mxu1 }
 0x330   :  { %v280_v4 = vadd.f32 %v279_v3, %v193_v61  ;;  %v588_v5 = vpop.f32.mrb[3].mxu1  ;;  %v287_v6 = vmul.f32 %v286_v62, %v277_v1 }
 0x332   :  { %289 = vadd.xlane.f32.xlu0 %v287_v6  ;;  %v288_v7 = vmul.f32 %v286_v62, %v280_v4 }
 0x334   :  { %291 = vadd.xlane.f32.xlu1 %v288_v7 }
 0x3bf   :  { %v290_v11 = vpop.xlane.xlu0 %289 }
 0x3c0   :  { %v293_v12 = vmul.f32 0.020833334, %v290_v11 }
 0x3c1   :  { %v292_v13 = vpop.xlane.xlu1 %291 }
 0x3c2   :  { %v295_v14 = vsub.f32 %v277_v1, %v293_v12  ;;  %v294_v15 = vmul.f32 0.020833334, %v292_v13  ;;  %v473_v12 = vrot.slane %v346_v48, %v836_v45 }
 0x3c4   :  { %v296_v16 = vsub.f32 %v280_v4, %v294_v15  ;;  %v297_v17 = vmul.f32 %v295_v14, %v286_v62  ;;  %v479_v15 = vrot.slane %v346_v48, %v840_v47 }
 0x3c6   :  { %v299_v18 = vmul.f32 %v297_v17, %v297_v17  ;;  %v298_v19 = vmul.f32 %v296_v16, %v286_v62 }
 0x3c8   :  { %301 = vadd.xlane.f32.xlu0 %v299_v18  ;;  %v300_v20 = vmul.f32 %v298_v19, %v298_v19 }
 0x3ca   :  { %303 = vadd.xlane.f32.xlu1 %v300_v20 }
 0x455   :  { %v302_v28 = vpop.xlane.xlu0 %301 }
 0x456   :  { %v305_v29 = vmul.f32 0.020833334, %v302_v28 }
 0x457   :  { %v304_v30 = vpop.xlane.xlu1 %303 }
 0x458   :  { %v307_v31 = vadd.f32 1e-05, %v305_v29  ;;  %v306_v32 = vmul.f32 0.020833334, %v304_v30 }
 0x45a   :  { %641 = vrsqrt.f32 %v307_v31  ;;  %v308_v33 = vadd.f32 1e-05, %v306_v32 }
 0x45c   :  { %643 = vrsqrt.f32 %v308_v33 }
 0x464   :  { %v642_v35 = vpop.eup %641 }
 0x465   :  { %v311_v37 = vmul.f32 %v642_v35, %v297_v17 }
 0x466   :  { %v644_v38 = vpop.eup %643 }
 0x467   :  { %v312_v39 = vmul.f32 %v644_v38, %v298_v19  ;;  %v317_v40 = vmul.f32 %v316_v34, %v311_v37 }
 0x469   :  { %v318_v41 = vmul.f32 %v316_v34, %v312_v39  ;;  %v323_v0 = vadd.f32 %v322_v36, %v317_v40 }
 0x46b   :  { %v324_v42 = vadd.f32 %v322_v36, %v318_v41  ;;  %v325_v43 = vmax.f32 %v323_v0, 0.0 }
 0x46d   :  { %v326_v44 = vmax.f32 %v324_v42, 0.0 }
 0x46f   :  { %v327_v46 = vpack.c.bf16 %v326_v44, %v325_v43 }
 0x471   :  { %606 = vmatmul.mubr.bf16.vlgmr.msra.gmra.mrb[4].mxu0 %v327_v46 }
 0x544   :  { %v433_v51 = vpop.f32.mrb[4].mxu0 }
 0x545   :  { %v434_v52 = vadd.f32 %v433_v51, %v350_v49  ;;  %v607_v53 = vpop.f32.mrb[5].mxu0 }
 0x546   :  { %v436_v54 = vpop.f32.mrb[6].mxu0 }
 0x547   :  { %v437_v55 = vadd.f32 %v436_v54, %v350_v49  ;;  %v608_v56 = vpop.f32.mrb[7].mxu0  ;;  %v444_v57 = vmul.f32 %v443_v50, %v434_v52 }
 0x549   :  { %446 = vadd.xlane.f32.xlu0 %v444_v57  ;;  %v445_v58 = vmul.f32 %v443_v50, %v437_v55 }
 0x54b   :  { %448 = vadd.xlane.f32.xlu1 %v445_v58 }
 0x5d6   :  { %v447_v59 = vpop.xlane.xlu0 %446 }
 0x5d7   :  { %v450_v60 = vmul.f32 0.0625, %v447_v59 }
 0x5d8   :  { %v449_v61 = vpop.xlane.xlu1 %448 }
 0x5d9   :  { %v452_v62 = vsub.f32 %v434_v52, %v450_v60  ;;  %v451_v63 = vmul.f32 0.0625, %v449_v61 }
 0x5db   :  { %v453_v1 = vsub.f32 %v437_v55, %v451_v63  ;;  %v454_v2 = vmul.f32 %v452_v62, %v443_v50 }
 0x5dd   :  { %v456_v8 = vmul.f32 %v454_v2, %v454_v2  ;;  %v455_v3 = vmul.f32 %v453_v1, %v443_v50 }
 0x5df   :  { %458 = vadd.xlane.f32.xlu0 %v456_v8  ;;  %v457_v10 = vmul.f32 %v455_v3, %v455_v3 }
 0x5e1   :  { %460 = vadd.xlane.f32.xlu1 %v457_v10 }
 0x66c   :  { %v459_v4 = vpop.xlane.xlu0 %458 }
 0x66d   :  { %v462_v5 = vmul.f32 0.0625, %v459_v4 }
 0x66e   :  { %v461_v6 = vpop.xlane.xlu1 %460 }
 0x66f   :  { %v464_v7 = vadd.f32 1e-05, %v462_v5  ;;  %v463_v9 = vmul.f32 0.0625, %v461_v6 }
 0x671   :  { %645 = vrsqrt.f32 %v464_v7  ;;  %v465_v11 = vadd.f32 1e-05, %v463_v9 }
 0x673   :  { %647 = vrsqrt.f32 %v465_v11 }
 0x67b   :  { %v646_v13 = vpop.eup %645 }
 0x67c   :  { %v468_v14 = vmul.f32 %v646_v13, %v454_v2 }
 0x67d   :  { %v648_v16 = vpop.eup %647 }
 0x67e   :  { %v469_v17 = vmul.f32 %v648_v16, %v455_v3  ;;  %v474_v18 = vmul.f32 %v473_v12, %v468_v14 }
 0x680   :  { %v475_v19 = vmul.f32 %v473_v12, %v469_v17  ;;  %v480_v20 = vadd.f32 %v479_v15, %v474_v18 }
 0x682   :  { %v481_v21 = vadd.f32 %v479_v15, %v475_v19  ;;  %v482_v22 = vmax.f32 %v480_v20, 0.0 }
 0x684   :  { %v483_v23 = vmax.f32 %v481_v21, 0.0 }
 0x686   :  { %v538_v24 = vpack.c.bf16 %v483_v23, %v482_v22 }
 0x688   :  { %539 = vst [vmem:[#allocation8] sm:$0xff] %v538_v24  }
 0x689   :  { %726 = shalt.err (!%p723_p0)
}
 0x68a   :  { %s727_s29 = scalar_lea.hbm %s877_s3, 128 }
 0x68b   :  { %p728_p1 = scmp.ne.s32.totalorder %s877_s3, %s727_s29  ;;  %p731_p2 = scmp.lt.u32.totalorder %s727_s29, %s877_s3 }
 0x68d   :  { %p733_p3 = pnand %p731_p2, %p728_p1 }
 0x68f   :  { %736 = shalt.err (!%p733_p3)
}
 0x690   :  { %505 = dma.vmem_to_hbm [thread:$0]  %s500_s25, 128, %s877_s3, [#allocation4], %s744_s22, %s744_s22, %s745_s23  }
 0x691   :  { %741 = dma.done.wait [#allocation4], 128  }
 0x692   :  { %742 = vsyncadd [#allocation4], 4294967168 }
 0x693   :  { %509 = vsyncpa [#allocation3], 1 }
 0x694   :  { %510 = vsyncpa [#allocation6], 1 }
 0x695   :  { %511 = vsyncpa [#allocation4], 1 }

// kernel: tpu_custom_call.1
= control target key start
LH: loop header
LB: loop body
LE: loop exit
PB: predicated region body
PF: predicated region fallthrough
CT: control target
= control target key end

     0   :  { %8 = vsyncpa [#allocation3], 0  ;;  %s874_s0 = inlined_call_operand.hbm [shape: f32[16,32], index: 0, kind: input, shape index: {}]   ;;  %s875_s1 = inlined_call_operand.hbm [shape: bf16[3,128,128], index: 1, kind: input, shape index: {}]   ;;  %s876_s2 = inlined_call_operand.hbm [shape: f32[3,8,128], index: 2, kind: input, shape index: {}]   ;;  %s877_s3 = inlined_call_operand.hbm [shape: bf16[16,128], index: 3, kind: output, shape index: {}]  }
   0x1   :  { %9 = vsyncpa [#allocation6], 0 }
   0x2   :  { %10 = vsyncpa [#allocation4], 0  ;;  %s743_s12 = smov [#allocation5]   ;;  %s649_s16 = scalar_lea.hbm %s875_s1, 3072 }
   0x3   :  { %s28_s13 = sshll.u32 %s743_s12, 4  ;;  %p650_p0 = scmp.ne.s32.totalorder %s875_s1, %s649_s16  ;;  %s29_s13 = int_to_ptr.vmem [resolvable:$true] %s28_s13 }
   0x4   :  { %p653_p1 = scmp.lt.u32.totalorder %s649_s16, %s875_s1 }
   0x6   :  { %p655_p2 = pnand %p653_p1, %p650_p0 }
   0x8   :  { %658 = shalt.err (!%p655_p2)
}
   0x9   :  { %s659_s21 = scalar_lea.vmem %s29_s13, 3072  ;;  %p664_p4 = scmp.lt.s32.totalorder %s29_s13, %s29_s13 }
   0xa   :  { %p660_p3 = scmp.ne.s32.totalorder %s29_s13, %s659_s21  ;;  %p665_p5 = scmp.lt.s32.totalorder %s659_s21, %s659_s21 }
   0xc   :  { %p666_p6 = por %p665_p5, %p664_p4 }
   0xe   :  { %p667_p7 = pnand %p666_p6, %p660_p3 }
  0x10   :  { %670 = shalt.err (!%p667_p7)
}
  0x11   :  { %s744_s22 = smov 64   ;;  %s745_s23 = smov 4  }
  0x12   :  { %34 = dma.hbm_to_vmem [thread:$0]  %s875_s1, 3072, %s29_s13, [#allocation6], %s744_s22, %s744_s22, %s745_s23  }
  0x13   :  { %s746_s26 = smov [#allocation2]   ;;  %s671_s30 = scalar_lea.hbm %s874_s0, 256 }
  0x14   :  { %s16_s27 = sshll.u32 %s746_s26, 4  ;;  %p672_p8 = scmp.ne.s32.totalorder %s874_s0, %s671_s30  ;;  %s17_s27 = int_to_ptr.vmem [resolvable:$true] %s16_s27 }
  0x15   :  { %p675_p9 = scmp.lt.u32.totalorder %s671_s30, %s874_s0 }
  0x17   :  { %p677_p10 = pnand %p675_p9, %p672_p8 }
  0x19   :  { %680 = shalt.err (!%p677_p10)
}
  0x1a   :  { %s681_s8 = scalar_lea.vmem %s17_s27, 256  ;;  %p686_p12 = scmp.lt.s32.totalorder %s17_s27, %s17_s27 }
  0x1b   :  { %p682_p11 = scmp.ne.s32.totalorder %s17_s27, %s681_s8  ;;  %p687_p13 = scmp.lt.s32.totalorder %s681_s8, %s681_s8 }
  0x1d   :  { %p688_p0 = por %p687_p13, %p686_p12 }
  0x1f   :  { %p689_p1 = pnand %p688_p0, %p682_p11 }
  0x21   :  { %692 = shalt.err (!%p689_p1)
}
  0x22   :  { %s747_s1 = smov 128   ;;  %s748_s9 = smov 8  }
  0x23   :  { %22 = dma.hbm_to_vmem [thread:$0]  %s874_s0, 256, %s17_s27, [#allocation3], %s747_s1, %s747_s1, %s748_s9  }
  0x24   :  { %s749_s12 = smov [#allocation7]   ;;  %s693_s16 = scalar_lea.hbm %s876_s2, 384 }
  0x25   :  { %s40_s13 = sshll.u32 %s749_s12, 4  ;;  %p694_p2 = scmp.ne.s32.totalorder %s876_s2, %s693_s16  ;;  %s41_s13 = int_to_ptr.vmem [resolvable:$true] %s40_s13 }
  0x26   :  { %p697_p3 = scmp.lt.u32.totalorder %s693_s16, %s876_s2 }
  0x28   :  { %p699_p4 = pnand %p697_p3, %p694_p2 }
  0x2a   :  { %702 = shalt.err (!%p699_p4)
}
  0x2b   :  { %s703_s21 = scalar_lea.vmem %s41_s13, 384  ;;  %p708_p6 = scmp.lt.s32.totalorder %s41_s13, %s41_s13 }
  0x2c   :  { %p704_p5 = scmp.ne.s32.totalorder %s41_s13, %s703_s21  ;;  %p709_p7 = scmp.lt.s32.totalorder %s703_s21, %s703_s21 }
  0x2e   :  { %p710_p8 = por %p709_p7, %p708_p6 }
  0x30   :  { %p711_p9 = pnand %p710_p8, %p704_p5 }
  0x32   :  { %714 = shalt.err (!%p711_p9)
}
  0x33   :  { %46 = dma.hbm_to_vmem [thread:$0]  %s876_s2, 384, %s41_s13, [#allocation6], %s747_s1, %s747_s1, %s748_s9  }
  0x34   :  { %737 = dma.done.wait [#allocation3], 256  }
  0x35   :  { %738 = vsyncadd [#allocation3], 4294967040 }
  0x36   :  { %739 = dma.done.wait [#allocation6], 3456  }
  0x37   :  { %740 = vsyncadd [#allocation6], 4294963840  ;;  %v750_v0 = vmov 0.0   ;;  %vm751_vm0 = vmmov 0   ;;  %v619_v1 = vld [vmem:[#allocation5] sm:$0xff]   ;;  %v620_v2 = vld [vmem:[#allocation5 + $0x8] sm:$0xff]   ;;  %v65_v6 = vlaneseq }
  0x38   :  { %561 = vmatprep.subr.bf16.mxu0 %v750_v0  ;;  %565 = vmatprep.mubr.msk.bf16.mxu0 %vm751_vm0, %v750_v0  ;;  %v57_v3 = vld [vmem:[#allocation2] sm:$0xff]  ;;  %v58_v4 = vld [vmem:[#allocation2 + $0x8] sm:$0xff]  ;;  %vm81_vm1 = vcmask 261120   ;;  %v821_v9 = vld [vmem:[#allocation7] sm:$0xff]  ;;  %s752_s2 = smov [#allocation8]  }
  0x39   :  { %569 = vmatprep.subr.bf16.mxu1 %v750_v0  ;;  %585 = vmatprep.mubr.msk.bf16.mxu1 %vm751_vm0, %v750_v0  ;;  %v59_v5 = vpack.c.bf16 %v58_v4, %v57_v3  ;;  %v66_v7 = vshrl.u32 %v65_v6, 7  ;;  %v621_v21 = vld [vmem:[#allocation5 + $0x40] sm:$0xff]   ;;  %v622_v32 = vld [vmem:[#allocation5 + $0x48] sm:$0xff]   ;;  %v623_v33 = vld [vmem:[#allocation5 + $0x50] sm:$0xff]   ;;  %s499_s25 = sshll.u32 %s752_s2, 4  ;;  %s500_s25 = int_to_ptr.vmem [resolvable:$true] %s499_s25 }
  0x3a   :  { %562 = vmatpush3.bf16.msra.mxu0 %v619_v1  ;;  %570 = vmatpush3.bf16.msra.mxu1 %v621_v21  ;;  %v624_v34 = vld [vmem:[#allocation5 + $0x58] sm:$0xff]   ;;  %v625_v35 = vld [vmem:[#allocation5 + $0x60] sm:$0xff]   ;;  %v626_v36 = vld [vmem:[#allocation5 + $0x68] sm:$0xff]   ;;  %s715_s26 = scalar_lea.vmem %s500_s25, 128  ;;  %p720_p11 = scmp.lt.s32.totalorder %s500_s25, %s500_s25 }
  0x3b   :  { %563 = vmatprep.subr.bf16.mxu0 %v750_v0  ;;  %v819_v8 = vsub.s32 0, %v66_v7  ;;  %v823_v10 = vsub.s32 3, %v66_v7  ;;  %571 = vmatprep.subr.bf16.mxu1 %v750_v0  ;;  %v627_v37 = vld [vmem:[#allocation5 + $0x70] sm:$0xff]   ;;  %v628_v38 = vld [vmem:[#allocation5 + $0x78] sm:$0xff]   ;;  %v836_v45 = vsub.s32 1, %v66_v7  ;;  %v840_v47 = vsub.s32 2, %v66_v7  ;;  %p716_p10 = scmp.ne.s32.totalorder %s500_s25, %s715_s26  ;;  %p721_p12 = scmp.lt.s32.totalorder %s715_s26, %s715_s26 }
  0x3c   :  { %v189_v60 = vld [vmem:[#allocation7 + $0x8] sm:$0xff] }
  0x3d   :  { %v68_v11 = vrot.slane %v821_v9, %v819_v8  ;;  %v129_v12 = vrot.slane %v821_v9, %v823_v10  ;;  %v159_v46 = vrot.slane %v821_v9, %v836_v45  ;;  %v165_v51 = vrot.slane %v821_v9, %v840_v47  ;;  %v629_v9 = vld [vmem:[#allocation5 + $0x80] sm:$0xff]   ;;  %v630_v21 = vld [vmem:[#allocation5 + $0x88] sm:$0xff]   ;;  %p722_p13 = por %p721_p12, %p720_p11 }
  0x3e   :  { %564 = vmatpush3.bf16.msra.mxu0 %v620_v2  ;;  %572 = vmatpush3.bf16.msra.mxu1 %v622_v32  ;;  %v193_v61 = vrot.slane %v189_v60, %v819_v8  ;;  %v286_v62 = vrot.slane %v189_v60, %v823_v10 }
  0x3f   :  { %589 = vmatprep.subr.bf16.mxu0 %v750_v0  ;;  %573 = vmatprep.subr.bf16.mxu1 %v750_v0  ;;  %p723_p0 = pnand %p722_p13, %p716_p10 }
  0x41   :  { %566 = vmatmul.mubr.msk.bf16.vlgmr.msra.gmra.mrb[0].mxu0 %vm81_vm1, %v59_v5 }
  0x42   :  { %605 = vmatprep.mubr.msk.bf16.mxu0 %vm751_vm0, %v750_v0  ;;  %574 = vmatpush3.bf16.msra.mxu1 %v623_v33 }
  0x43   :  { %575 = vmatprep.subr.bf16.mxu1 %v750_v0  ;;  %590 = vmatpush3.bf16.msra.mxu0 %v629_v9 }
  0x44   :  { %591 = vmatprep.subr.bf16.mxu0 %v750_v0 }
  0x46   :  { %576 = vmatpush3.bf16.msra.mxu1 %v624_v34  ;;  %v316_v34 = vrot.slane %v189_v60, %v836_v45 }
  0x47   :  { %577 = vmatprep.subr.bf16.mxu1 %v750_v0  ;;  %592 = vmatpush3.bf16.msra.mxu0 %v630_v21 }
  0x48   :  { %593 = vmatprep.subr.bf16.mxu0 %v750_v0 }
  0x4a   :  { %578 = vmatpush3.bf16.msra.mxu1 %v625_v35 }
  0x4b   :  { %579 = vmatprep.subr.bf16.mxu1 %v750_v0 }
  0x4e   :  { %580 = vmatpush3.bf16.msra.mxu1 %v626_v36  ;;  %v322_v36 = vrot.slane %v189_v60, %v840_v47 }
  0x4f   :  { %581 = vmatprep.subr.bf16.mxu1 %v750_v0 }
  0x52   :  { %582 = vmatpush3.bf16.msra.mxu1 %v627_v37 }
  0x53   :  { %583 = vmatprep.subr.bf16.mxu1 %v750_v0 }
  0x56   :  { %584 = vmatpush3.bf16.msra.mxu1 %v628_v38 }
 0x114   :  { %v119_v13 = vpop.f32.mrb[0].mxu0 }
 0x115   :  { %v120_v14 = vadd.f32 %v119_v13, %v68_v11  ;;  %v567_v15 = vpop.f32.mrb[1].mxu0 }
 0x116   :  { %v122_v16 = vpop.f32.mrb[2].mxu0 }
 0x117   :  { %v123_v17 = vadd.f32 %v122_v16, %v68_v11  ;;  %v568_v18 = vpop.f32.mrb[3].mxu0  ;;  %v130_v19 = vmul.f32 %v129_v12, %v120_v14 }
 0x119   :  { %132 = vadd.xlane.f32.xlu0 %v130_v19  ;;  %v131_v20 = vmul.f32 %v129_v12, %v123_v17 }
 0x11d   :  { %134 = vadd.xlane.f32.xlu0 %v131_v20 }
 0x1a6   :  { %v133_v22 = vpop.xlane.xlu0 %132 }
 0x1a7   :  { %v136_v23 = vmul.f32 0.015625, %v133_v22  ;;  %v631_v22 = vld [vmem:[#allocation5 + $0x90] sm:$0xff]  }
 0x1a8   :  { %594 = vmatpush3.bf16.msra.mxu0 %v631_v22 }
 0x1a9   :  { %v138_v24 = vsub.f32 %v120_v14, %v136_v23  ;;  %595 = vmatprep.subr.bf16.mxu0 %v750_v0  ;;  %v632_v23 = vld [vmem:[#allocation5 + $0x98] sm:$0xff]  }
 0x1aa   :  { %v135_v25 = vpop.xlane.xlu0 %134 }
 0x1ab   :  { %v137_v26 = vmul.f32 0.015625, %v135_v25  ;;  %v140_v27 = vmul.f32 %v138_v24, %v129_v12  ;;  %v633_v24 = vld [vmem:[#allocation5 + $0xa0] sm:$0xff]   ;;  %v634_v25 = vld [vmem:[#allocation5 + $0xa8] sm:$0xff]  }
 0x1ac   :  { %596 = vmatpush3.bf16.msra.mxu0 %v632_v23 }
 0x1ad   :  { %v139_v28 = vsub.f32 %v123_v17, %v137_v26  ;;  %v142_v29 = vmul.f32 %v140_v27, %v140_v27  ;;  %597 = vmatprep.subr.bf16.mxu0 %v750_v0  ;;  %v635_v26 = vld [vmem:[#allocation5 + $0xb0] sm:$0xff]  }
 0x1af   :  { %144 = vadd.xlane.f32.xlu1 %v142_v29  ;;  %v141_v30 = vmul.f32 %v139_v28, %v129_v12 }
 0x1b0   :  { %598 = vmatpush3.bf16.msra.mxu0 %v633_v24 }
 0x1b1   :  { %v143_v31 = vmul.f32 %v141_v30, %v141_v30  ;;  %599 = vmatprep.subr.bf16.mxu0 %v750_v0 }
 0x1b3   :  { %146 = vadd.xlane.f32.xlu1 %v143_v31 }
 0x1b4   :  { %600 = vmatpush3.bf16.msra.mxu0 %v634_v25 }
 0x1b5   :  { %601 = vmatprep.subr.bf16.mxu0 %v750_v0 }
 0x1b8   :  { %602 = vmatpush3.bf16.msra.mxu0 %v635_v26 }
 0x1b9   :  { %603 = vmatprep.subr.bf16.mxu0 %v750_v0 }
 0x23c   :  { %v145_v39 = vpop.xlane.xlu1 %144 }
 0x23d   :  { %v148_v40 = vmul.f32 0.015625, %v145_v39 }
 0x23f   :  { %v150_v41 = vadd.f32 1e-05, %v148_v40 }
 0x240   :  { %v147_v42 = vpop.xlane.xlu1 %146 }
 0x241   :  { %637 = vrsqrt.f32 %v150_v41  ;;  %v149_v43 = vmul.f32 0.015625, %v147_v42 }
 0x243   :  { %v151_v44 = vadd.f32 1e-05, %v149_v43 }
 0x245   :  { %639 = vrsqrt.f32 %v151_v44 }
 0x24b   :  { %v638_v48 = vpop.eup %637 }
 0x24c   :  { %v154_v49 = vmul.f32 %v638_v48, %v140_v27  ;;  %v636_v27 = vld [vmem:[#allocation5 + $0xb8] sm:$0xff]   ;;  %v346_v48 = vld [vmem:[#allocation7 + $0x10] sm:$0xff] }
 0x24d   :  { %604 = vmatpush3.bf16.msra.mxu0 %v636_v27 }
 0x24e   :  { %v160_v50 = vmul.f32 %v159_v46, %v154_v49  ;;  %v350_v49 = vrot.slane %v346_v48, %v819_v8 }
 0x24f   :  { %v640_v52 = vpop.eup %639 }
 0x250   :  { %v155_v53 = vmul.f32 %v640_v52, %v141_v30  ;;  %v166_v55 = vadd.f32 %v165_v51, %v160_v50  ;;  %v443_v50 = vrot.slane %v346_v48, %v823_v10 }
 0x252   :  { %v161_v54 = vmul.f32 %v159_v46, %v155_v53  ;;  %v168_v57 = vmax.f32 %v166_v55, 0.0 }
 0x254   :  { %v167_v56 = vadd.f32 %v165_v51, %v161_v54 }
 0x256   :  { %v169_v58 = vmax.f32 %v167_v56, 0.0 }
 0x258   :  { %v170_v59 = vpack.c.bf16 %v169_v58, %v168_v57 }
 0x25a   :  { %586 = vmatmul.mubr.bf16.vlgmr.msra.gmra.mrb[0].mxu1 %v170_v59 }
 0x32d   :  { %v276_v63 = vpop.f32.mrb[0].mxu1 }
 0x32e   :  { %v277_v1 = vadd.f32 %v276_v63, %v193_v61  ;;  %v587_v2 = vpop.f32.mrb[1].mxu1 }
 0x32f   :  { %v279_v3 = vpop.f32.mrb[2].mxu1 }
 0x330   :  { %v280_v4 = vadd.f32 %v279_v3, %v193_v61  ;;  %v588_v5 = vpop.f32.mrb[3].mxu1  ;;  %v287_v6 = vmul.f32 %v286_v62, %v277_v1 }
 0x332   :  { %289 = vadd.xlane.f32.xlu0 %v287_v6  ;;  %v288_v7 = vmul.f32 %v286_v62, %v280_v4 }
 0x334   :  { %291 = vadd.xlane.f32.xlu1 %v288_v7 }
 0x3bf   :  { %v290_v11 = vpop.xlane.xlu0 %289 }
 0x3c0   :  { %v293_v12 = vmul.f32 0.020833334, %v290_v11 }
 0x3c1   :  { %v292_v13 = vpop.xlane.xlu1 %291 }
 0x3c2   :  { %v295_v14 = vsub.f32 %v277_v1, %v293_v12  ;;  %v294_v15 = vmul.f32 0.020833334, %v292_v13  ;;  %v473_v12 = vrot.slane %v346_v48, %v836_v45 }
 0x3c4   :  { %v296_v16 = vsub.f32 %v280_v4, %v294_v15  ;;  %v297_v17 = vmul.f32 %v295_v14, %v286_v62  ;;  %v479_v15 = vrot.slane %v346_v48, %v840_v47 }
 0x3c6   :  { %v299_v18 = vmul.f32 %v297_v17, %v297_v17  ;;  %v298_v19 = vmul.f32 %v296_v16, %v286_v62 }
 0x3c8   :  { %301 = vadd.xlane.f32.xlu0 %v299_v18  ;;  %v300_v20 = vmul.f32 %v298_v19, %v298_v19 }
 0x3ca   :  { %303 = vadd.xlane.f32.xlu1 %v300_v20 }
 0x455   :  { %v302_v28 = vpop.xlane.xlu0 %301 }
 0x456   :  { %v305_v29 = vmul.f32 0.020833334, %v302_v28 }
 0x457   :  { %v304_v30 = vpop.xlane.xlu1 %303 }
 0x458   :  { %v307_v31 = vadd.f32 1e-05, %v305_v29  ;;  %v306_v32 = vmul.f32 0.020833334, %v304_v30 }
 0x45a   :  { %641 = vrsqrt.f32 %v307_v31  ;;  %v308_v33 = vadd.f32 1e-05, %v306_v32 }
 0x45c   :  { %643 = vrsqrt.f32 %v308_v33 }
 0x464   :  { %v642_v35 = vpop.eup %641 }
 0x465   :  { %v311_v37 = vmul.f32 %v642_v35, %v297_v17 }
 0x466   :  { %v644_v38 = vpop.eup %643 }
 0x467   :  { %v312_v39 = vmul.f32 %v644_v38, %v298_v19  ;;  %v317_v40 = vmul.f32 %v316_v34, %v311_v37 }
 0x469   :  { %v318_v41 = vmul.f32 %v316_v34, %v312_v39  ;;  %v323_v0 = vadd.f32 %v322_v36, %v317_v40 }
 0x46b   :  { %v324_v42 = vadd.f32 %v322_v36, %v318_v41  ;;  %v325_v43 = vmax.f32 %v323_v0, 0.0 }
 0x46d   :  { %v326_v44 = vmax.f32 %v324_v42, 0.0 }
 0x46f   :  { %v327_v46 = vpack.c.bf16 %v326_v44, %v325_v43 }
 0x471   :  { %606 = vmatmul.mubr.bf16.vlgmr.msra.gmra.mrb[4].mxu0 %v327_v46 }
 0x544   :  { %v433_v51 = vpop.f32.mrb[4].mxu0 }
 0x545   :  { %v434_v52 = vadd.f32 %v433_v51, %v350_v49  ;;  %v607_v53 = vpop.f32.mrb[5].mxu0 }
 0x546   :  { %v436_v54 = vpop.f32.mrb[6].mxu0 }
 0x547   :  { %v437_v55 = vadd.f32 %v436_v54, %v350_v49  ;;  %v608_v56 = vpop.f32.mrb[7].mxu0  ;;  %v444_v57 = vmul.f32 %v443_v50, %v434_v52 }
 0x549   :  { %446 = vadd.xlane.f32.xlu0 %v444_v57  ;;  %v445_v58 = vmul.f32 %v443_v50, %v437_v55 }
 0x54b   :  { %448 = vadd.xlane.f32.xlu1 %v445_v58 }
 0x5d6   :  { %v447_v59 = vpop.xlane.xlu0 %446 }
 0x5d7   :  { %v450_v60 = vmul.f32 0.0625, %v447_v59 }
 0x5d8   :  { %v449_v61 = vpop.xlane.xlu1 %448 }
 0x5d9   :  { %v452_v62 = vsub.f32 %v434_v52, %v450_v60  ;;  %v451_v63 = vmul.f32 0.0625, %v449_v61 }
 0x5db   :  { %v453_v1 = vsub.f32 %v437_v55, %v451_v63  ;;  %v454_v2 = vmul.f32 %v452_v62, %v443_v50 }
 0x5dd   :  { %v456_v8 = vmul.f32 %v454_v2, %v454_v2  ;;  %v455_v3 = vmul.f32 %v453_v1, %v443_v50 }
 0x5df   :  { %458 = vadd.xlane.f32.xlu0 %v456_v8  ;;  %v457_v10 = vmul.f32 %v455_v3, %v455_v3 }
 0x5e1   :  { %460 = vadd.xlane.f32.xlu1 %v457_v10 }
 0x66c   :  { %v459_v4 = vpop.xlane.xlu0 %458 }
 0x66d   :  { %v462_v5 = vmul.f32 0.0625, %v459_v4 }
 0x66e   :  { %v461_v6 = vpop.xlane.xlu1 %460 }
 0x66f   :  { %v464_v7 = vadd.f32 1e-05, %v462_v5  ;;  %v463_v9 = vmul.f32 0.0625, %v461_v6 }
 0x671   :  { %645 = vrsqrt.f32 %v464_v7  ;;  %v465_v11 = vadd.f32 1e-05, %v463_v9 }
 0x673   :  { %647 = vrsqrt.f32 %v465_v11 }
 0x67b   :  { %v646_v13 = vpop.eup %645 }
 0x67c   :  { %v468_v14 = vmul.f32 %v646_v13, %v454_v2 }
 0x67d   :  { %v648_v16 = vpop.eup %647 }
 0x67e   :  { %v469_v17 = vmul.f32 %v648_v16, %v455_v3  ;;  %v474_v18 = vmul.f32 %v473_v12, %v468_v14 }
 0x680   :  { %v475_v19 = vmul.f32 %v473_v12, %v469_v17  ;;  %v480_v20 = vadd.f32 %v479_v15, %v474_v18 }
 0x682   :  { %v481_v21 = vadd.f32 %v479_v15, %v475_v19  ;;  %v482_v22 = vmax.f32 %v480_v20, 0.0 }
 0x684   :  { %v483_v23 = vmax.f32 %v481_v21, 0.0 }
 0x686   :  { %v538_v24 = vpack.c.bf16 %v483_v23, %v482_v22 }
 0x688   :  { %539 = vst [vmem:[#allocation8] sm:$0xff] %v538_v24  }
 0x689   :  { %726 = shalt.err (!%p723_p0)
}
 0x68a   :  { %s727_s29 = scalar_lea.hbm %s877_s3, 128 }
 0x68b   :  { %p728_p1 = scmp.ne.s32.totalorder %s877_s3, %s727_s29  ;;  %p731_p2 = scmp.lt.u32.totalorder %s727_s29, %s877_s3 }
 0x68d   :  { %p733_p3 = pnand %p731_p2, %p728_p1 }
 0x68f   :  { %736 = shalt.err (!%p733_p3)
}
 0x690   :  { %505 = dma.vmem_to_hbm [thread:$0]  %s500_s25, 128, %s877_s3, [#allocation4], %s744_s22, %s744_s22, %s745_s23  }
 0x691   :  { %741 = dma.done.wait [#allocation4], 128  }
 0x692   :  { %742 = vsyncadd [#allocation4], 4294967168 }
 0x693   :  { %509 = vsyncpa [#allocation3], 1 }
 0x694   :  { %510 = vsyncpa [#allocation6], 1 }
 0x695   :  { %511 = vsyncpa [#allocation4], 1 }

</bundles_post_ra>
